<compile_context>
chip_gen: v7x
topology: tpu7x:2x2x1
jax: 0.10.0
libtpu: 0.0.40
codegen_flags: <defaults>
</compile_context>

<pallas_src>
import functools
import math

import numpy as np
import jax
import jax.numpy as jnp
from jax.experimental import pallas as pl
from jax.experimental.pallas import tpu as pltpu


# ----------------------------------------------------------------------------- #
# Helpers
# ----------------------------------------------------------------------------- #
def _round_up(x, m):
    return ((x + m - 1) // m) * m


@functools.lru_cache(maxsize=1)
def _vmem_limit_bytes():
    """Per-generation scoped-VMEM limit: ~3/4 of physical (v5e/v6e -> 96 MiB of 128,
    v7x -> 48 MiB of 64); conservative fallback when the query is unavailable."""
    try:
        cap = int(pltpu.get_tpu_info().vmem_capacity_bytes)
    except Exception:
        cap = 64 * 1024 * 1024
    return int(max(32 * 1024 * 1024, min(cap * 3 // 4, 96 * 1024 * 1024)))


def _tile_m(M):
    """Row-tile size: >=2 parallel tiles when M allows (v7x megacore), sublane mult 8."""
    return max(8, min(512, _round_up(-(-M // 2), 8)))


def _gelu_exact(x):
    # exact GELU via Abramowitz-Stegun erf approximation (|err| < 1.5e-7);
    # only exp/abs/sign so it lowers cleanly inside Mosaic kernels.
    z = x * 0.7071067811865476
    a = jnp.abs(z)
    t = 1.0 / (1.0 + 0.3275911 * a)
    poly = t * (0.254829592 + t * (-0.284496736 + t * (1.421413741
                + t * (-1.453152027 + t * 1.061405429))))
    erf = jnp.sign(z) * (1.0 - poly * jnp.exp(-a * a))
    return 0.5 * x * (1.0 + erf)


# ----------------------------------------------------------------------------- #
# Tiled linear (matmul + bias)
# ----------------------------------------------------------------------------- #
def _linear_kernel(x_ref, w_ref, b_ref, o_ref):
    # single-K-block fast path: no scratch, no pl.when, bias add in f32, bf16 store
    o_ref[...] = (jnp.dot(x_ref[...], w_ref[...],
                          preferred_element_type=jnp.float32)
                  + b_ref[...]).astype(o_ref.dtype)


def _linear_acc_kernel(x_ref, w_ref, b_ref, o_ref, acc_ref):
    @pl.when(pl.program_id(1) == 0)
    def _():
        acc_ref[...] = jnp.zeros_like(acc_ref)
    acc_ref[...] += jnp.dot(x_ref[...], w_ref[...],
                            preferred_element_type=jnp.float32)

    @pl.when(pl.program_id(1) == pl.num_programs(1) - 1)
    def _():
        o_ref[...] = (acc_ref[...] + b_ref[...]).astype(o_ref.dtype)


def pallas_linear(x2d, w, b=None, out_dtype=jnp.bfloat16):
    """(M,K) @ (K,N) + b.  bf16 operands, f32 accumulation, no wrapper-side padding."""
    x2d = jnp.asarray(x2d).astype(jnp.bfloat16)
    w = jnp.asarray(w).astype(jnp.bfloat16)
    M, K = x2d.shape
    _, N = w.shape
    bvec = (jnp.zeros((1, N), jnp.float32) if b is None
            else jnp.asarray(b, jnp.float32).reshape(1, N))
    TM = _tile_m(M)
    grid_m = pl.cdiv(M, TM)

    if K <= 1024:
        return pl.pallas_call(
            _linear_kernel,
            grid=(grid_m,),
            in_specs=[pl.BlockSpec((TM, K), lambda i: (i, 0)),
                      pl.BlockSpec((K, N), lambda i: (0, 0)),
                      pl.BlockSpec((1, N), lambda i: (0, 0))],
            out_specs=pl.BlockSpec((TM, N), lambda i: (i, 0)),
            out_shape=jax.ShapeDtypeStruct((M, N), out_dtype),
            compiler_params=pltpu.CompilerParams(
                dimension_semantics=("parallel",),
                vmem_limit_bytes=_vmem_limit_bytes()),
        )(x2d, w, bvec)

    # large-K fallback: K-tiled reduction with an f32 VMEM accumulator
    TK = 512
    Kp = _round_up(K, TK)
    xpad = jnp.pad(x2d, ((0, 0), (0, Kp - K)))
    wpad = jnp.pad(w, ((0, Kp - K), (0, 0)))
    return pl.pallas_call(
        _linear_acc_kernel,
        grid=(grid_m, Kp // TK),
        in_specs=[pl.BlockSpec((TM, TK), lambda i, kk: (i, kk)),
                  pl.BlockSpec((TK, N), lambda i, kk: (kk, 0)),
                  pl.BlockSpec((1, N), lambda i, kk: (0, 0))],
        out_specs=pl.BlockSpec((TM, N), lambda i, kk: (i, 0)),
        out_shape=jax.ShapeDtypeStruct((M, N), out_dtype),
        scratch_shapes=[pltpu.VMEM((TM, N), jnp.float32)],
        compiler_params=pltpu.CompilerParams(
            dimension_semantics=("parallel", "arbitrary"),
            vmem_limit_bytes=_vmem_limit_bytes()),
    )(xpad, wpad, bvec)


# ----------------------------------------------------------------------------- #
# Fused MSGRU cell with zero initial hidden state
#   new_state = (1 - sigmoid(x@Wz + bz)) * tanh(x@Wh + bh)
#   (with states=0 the reset gate r multiplies zeros, so it drops out exactly)
# ----------------------------------------------------------------------------- #
def _msgru_kernel(d, x_ref, w_ref, b_ref, o_ref):
    y = jnp.dot(x_ref[...], w_ref[...],
                preferred_element_type=jnp.float32) + b_ref[...]
    z = jax.nn.sigmoid(y[:, :d])          # EUP
    h = jnp.tanh(y[:, d:])                # EUP
    o_ref[...] = ((1.0 - z) * h).astype(o_ref.dtype)


def prep_msgru(tcp, d):
    """Pack the z-gate and h-candidate input-weights as one (d, 2d) matrix [Wz | Wh]."""
    wz = jnp.asarray(tcp["rz_w"], jnp.float32)[d:, :d].T       # (d, d)
    bz = jnp.asarray(tcp["rz_b"], jnp.float32)[d:]
    wh = jnp.asarray(tcp["h_w"], jnp.float32)[:, :d].T         # (d, d)
    bh = jnp.asarray(tcp["h_b"], jnp.float32)
    W = jnp.concatenate([wz, wh], axis=1).astype(jnp.bfloat16)  # (d, 2d)
    bvec = jnp.concatenate([bz, bh]).reshape(1, 2 * d)          # f32
    return W, bvec


def pallas_msgru(x2d, w_gate, b_gate, d):
    M = x2d.shape[0]
    TM = _tile_m(M)
    return pl.pallas_call(
        functools.partial(_msgru_kernel, d),
        grid=(pl.cdiv(M, TM),),
        in_specs=[pl.BlockSpec((TM, d), lambda i: (i, 0)),
                  pl.BlockSpec((d, 2 * d), lambda i: (0, 0)),
                  pl.BlockSpec((1, 2 * d), lambda i: (0, 0))],
        out_specs=pl.BlockSpec((TM, d), lambda i: (i, 0)),
        out_shape=jax.ShapeDtypeStruct((M, d), jnp.bfloat16),
        compiler_params=pltpu.CompilerParams(
            dimension_semantics=("parallel",),
            vmem_limit_bytes=_vmem_limit_bytes()),
    )(jnp.asarray(x2d).astype(jnp.bfloat16), w_gate, b_gate)


# ----------------------------------------------------------------------------- #
# Fused Inception_Block_V1 -> GELU -> Inception_Block_V1 (per period branch)
# ----------------------------------------------------------------------------- #
def _fused_inception_kernel(R0, Mrg, offs1, offs2, Cin, Cmid,
                            x_ref, mask_ref, w1_ref, b1_ref, w2_ref, b2_ref,
                            o_ref, lhs1_ref, mid_ref, lhs2_ref):
    # ---- stage 1: in-VMEM im2col -> one MXU push with K = T1*Cin ----
    if len(offs1) == 1 and offs1[0] == 0:
        lhs1 = x_ref[Mrg:Mrg + R0, :]
    else:
        for t, off in enumerate(offs1):
            lhs1_ref[:, t * Cin:(t + 1) * Cin] = x_ref[Mrg + off:Mrg + off + R0, :]
        lhs1 = lhs1_ref[...]
    acc1 = jnp.dot(lhs1, w1_ref[...], preferred_element_type=jnp.float32) + b1_ref[...]
    mid = _gelu_exact(acc1)
    if Mrg > 0:
        # zero the padded frame so stage 2 sees proper zero-padding
        mid = mid * mask_ref[...]

    # ---- stage 2: keep the d_ff intermediate in a bf16 VMEM scratch ----
    if len(offs2) == 1 and offs2[0] == 0:
        lhs2 = mid.astype(jnp.bfloat16)
    else:
        if Mrg > 0:
            # only the two thin margin strips are zeroed (cheap; safe under any
            # grid split across cores, unlike a program_id==0-gated init)
            mid_ref[0:Mrg, :] = jnp.zeros((Mrg, Cmid), mid_ref.dtype)
            mid_ref[Mrg + R0:Mrg + R0 + Mrg, :] = jnp.zeros((Mrg, Cmid), mid_ref.dtype)
        mid_ref[Mrg:Mrg + R0, :] = mid.astype(mid_ref.dtype)
        for t, off in enumerate(offs2):
            lhs2_ref[:, t * Cmid:(t + 1) * Cmid] = mid_ref[Mrg + off:Mrg + off + R0, :]
        lhs2 = lhs2_ref[...]
    o_ref[...] = (jnp.dot(lhs2, w2_ref[...], preferred_element_type=jnp.float32)
                  + b2_ref[...]).astype(o_ref.dtype)


def prep_inception_stack(conv_params):
    """Pack the per-kernel-size Conv2d taps into one (T*Cin, Cout) bf16 matrix whose
    row-block order matches the in-kernel im2col tap order.  Weights/bias are scaled
    by 1/num_kernels because Inception_Block_V1 averages its parallel convs."""
    nk = len(conv_params)
    Cout = int(np.asarray(conv_params[0][0]).shape[0])
    rows, ksizes = [], []
    bias = jnp.zeros((Cout,), jnp.float32)
    for (w, b) in conv_params:
        w = jnp.asarray(w, jnp.float32)
        ks = int(w.shape[-1])
        ksizes.append(ks)
        for dh in range(ks):
            for dw in range(ks):
                rows.append(w[:, :, dh, dw].T / nk)            # (Cin, Cout)
        bias = bias + jnp.asarray(b, jnp.float32) / nk
    Wp = jnp.concatenate(rows, axis=0).astype(jnp.bfloat16)    # (T*Cin, Cout)
    return Wp, bias.reshape(1, Cout), ksizes


def fused_inception(fmap, w1, b1, ks1, w2, b2, ks2, P, cout):
    """fmap: (B, H, W, Cin) channels-last float32 -> (B, H, W, cout) bf16."""
    B, H, W, Cin = fmap.shape
    Hp, Wp = H + 2 * P, W + 2 * P
    R0 = Hp * Wp
    Mrg = P * Wp + P
    R = R0 + 2 * Mrg
    Cmid = int(w1.shape[1])
    T1 = sum(ks * ks for ks in ks1)
    T2 = sum(ks * ks for ks in ks2)

    def tap_offsets(ksizes):
        offs = []
        for ks in ksizes:
            p = ks // 2
            for dh in range(ks):
                for dw in range(ks):
                    offs.append((dh - p) * Wp + (dw - p))
        return tuple(offs)

    offs1, offs2 = tap_offsets(ks1), tap_offsets(ks2)

    # zero-padded spatial map, flattened row-major, plus zero margins so every
    # statically-shifted tap slice stays in bounds (no HBM im2col inflation).
    xp = jnp.pad(fmap, ((0, 0), (P, P), (P, P), (0, 0)))
    xflat = jnp.pad(xp.reshape(B, R0, Cin),
                    ((0, 0), (Mrg, Mrg), (0, 0))).astype(jnp.bfloat16)
    hm = (np.arange(Hp) >= P) & (np.arange(Hp) < P + H)
    wm = (np.arange(Wp) >= P) & (np.arange(Wp) < P + W)
    mask = jnp.asarray((hm[:, None] & wm[None, :]).astype(np.float32).reshape(R0, 1))

    kern = functools.partial(_fused_inception_kernel, R0, Mrg, offs1, offs2, Cin, Cmid)
    out = pl.pallas_call(
        kern,
        grid=(B,),
        in_specs=[pl.BlockSpec((None, R, Cin), lambda b: (b, 0, 0)),
                  pl.BlockSpec((R0, 1), lambda b: (0, 0)),
                  pl.BlockSpec(tuple(w1.shape), lambda b: (0, 0)),
                  pl.BlockSpec(tuple(b1.shape), lambda b: (0, 0)),
                  pl.BlockSpec(tuple(w2.shape), lambda b: (0, 0)),
                  pl.BlockSpec(tuple(b2.shape), lambda b: (0, 0))],
        out_specs=pl.BlockSpec((None, R0, cout), lambda b: (b, 0, 0)),
        out_shape=jax.ShapeDtypeStruct((B, R0, cout), jnp.bfloat16),
        scratch_shapes=[pltpu.VMEM((R0, T1 * Cin), jnp.bfloat16),
                        pltpu.VMEM((R, Cmid), jnp.bfloat16),
                        pltpu.VMEM((R0, T2 * Cmid), jnp.bfloat16)],
        compiler_params=pltpu.CompilerParams(
            dimension_semantics=("parallel",),
            vmem_limit_bytes=_vmem_limit_bytes()),
    )(xflat, mask, w1, b1, w2, b2)

    return out.reshape(B, Hp, Wp, cout)[:, P:P + H, P:P + W, :]


# ----------------------------------------------------------------------------- #
# Fused TemporalCorrelation epilogue: weighted period sum + residual + LayerNorm
# ----------------------------------------------------------------------------- #
def _tc_epilogue_kernel(k, eps, pw_ref, res_ref, x_ref, g_ref, beta_ref, o_ref):
    bi = pl.program_id(0)
    acc = x_ref[...].astype(jnp.float32)
    for i in range(k):
        acc = acc + res_ref[i].astype(jnp.float32) * pw_ref[bi, i]
    mu = jnp.mean(acc, axis=-1, keepdims=True)
    var = jnp.mean(jnp.square(acc - mu), axis=-1, keepdims=True)
    y = (acc - mu) * jax.lax.rsqrt(var + eps)
    o_ref[...] = (y * g_ref[...] + beta_ref[...]).astype(o_ref.dtype)


def tc_epilogue(res_stack, x, pw, gamma, beta, eps=1e-5):
    B, k, Tt, N = res_stack.shape
    return pl.pallas_call(
        functools.partial(_tc_epilogue_kernel, k, eps),
        grid=(B,),
        in_specs=[pl.BlockSpec(memory_space=pltpu.MemorySpace.SMEM),
                  pl.BlockSpec((None, k, Tt, N), lambda b: (b, 0, 0, 0)),
                  pl.BlockSpec((None, Tt, N), lambda b: (b, 0, 0)),
                  pl.BlockSpec((1, N), lambda b: (0, 0)),
                  pl.BlockSpec((1, N), lambda b: (0, 0))],
        out_specs=pl.BlockSpec((None, Tt, N), lambda b: (b, 0, 0)),
        out_shape=jax.ShapeDtypeStruct((B, Tt, N), jnp.bfloat16),
        compiler_params=pltpu.CompilerParams(
            dimension_semantics=("parallel",),
            vmem_limit_bytes=_vmem_limit_bytes()),
    )(pw.astype(jnp.float32), res_stack, x,
      jnp.asarray(gamma, jnp.float32).reshape(1, N),
      jnp.asarray(beta, jnp.float32).reshape(1, N))


# ----------------------------------------------------------------------------- #
# Glue: circular conv1d, moving averages, FFT period selection, embeddings
# ----------------------------------------------------------------------------- #
def circular_conv1d(x_bcl, weight, bias=None):
    """Conv1d(kernel=k, stride=1, padding=k//2, padding_mode='circular')."""
    B, Cin, L = x_bcl.shape
    Cout, _, kk = weight.shape
    p = kk // 2
    xp = jnp.concatenate([x_bcl[:, :, L - p:], x_bcl, x_bcl[:, :, :p]], axis=-1)
    cols = [xp[:, :, i:i + L] for i in range(kk)]
    patch = jnp.stack(cols, axis=2).transpose(0, 3, 1, 2).reshape(B * L, Cin * kk)
    w2 = jnp.asarray(weight, jnp.float32).reshape(Cout, Cin * kk).T
    out = pallas_linear(patch, w2, bias, out_dtype=jnp.float32)
    return out.reshape(B, L, Cout).transpose(0, 2, 1)


def moving_avg_along(x, kernel_size, axis):
    k = kernel_size
    front = k - 1 - (k - 1) // 2
    end = (k - 1) // 2
    L = x.shape[axis]
    first = jax.lax.slice_in_dim(x, 0, 1, axis=axis)
    last = jax.lax.slice_in_dim(x, L - 1, L, axis=axis)
    xp = jnp.concatenate(
        [jnp.repeat(first, front, axis=axis), x, jnp.repeat(last, end, axis=axis)],
        axis=axis)
    windows = [jax.lax.slice_in_dim(xp, i, i + L, axis=axis) for i in range(k)]
    return sum(windows) / float(k)


def series_decomp_multi(x, kernels=(13, 17)):
    mas = [moving_avg_along(x, k, axis=1) for k in kernels]
    res = [x - ma for ma in mas]
    return sum(res) / len(res), sum(mas) / len(mas)


def fft_for_period(x, k):
    """|rfft| stays on device; only the tiny (T//2+1,) mean-magnitude vector is read
    back because the selected periods define static reshape shapes (mirrors the
    .detach().cpu().numpy() path of the PyTorch reference)."""
    B, T, N = x.shape
    amp = jnp.abs(jnp.fft.rfft(x.astype(jnp.float32), axis=1))        # (B, F, N)
    freq = np.array(jax.device_get(amp.mean(axis=0).mean(axis=-1)),
                    dtype=np.float64)                                  # writable copy
    freq[0] = 0.0
    top_list = np.argsort(-freq)[:(k // 3) * 2]
    freq[0] = 1000.0
    low_list = np.argsort(freq)[:(k // 3)]
    lst = np.concatenate([low_list, top_list]).astype(np.int64)
    lst.sort()
    lst = np.maximum(lst, 1)                    # guard against a degenerate 0 index
    period = (T // lst).astype(np.int64)
    period_weight = amp.mean(axis=-1)[:, lst]   # (B, k) on device
    return period, period_weight


def positional_encoding(max_len, d_model):
    pe = np.zeros((max_len, d_model), np.float32)
    position = np.arange(max_len, dtype=np.float32)[:, None]
    div = np.exp(np.arange(0, d_model, 2, dtype=np.float32)
                 * -(math.log(10000.0) / d_model))
    pe[:, 0::2] = np.sin(position * div)
    pe[:, 1::2] = np.cos(position * div)
    return jnp.asarray(pe)


def data_embedding(x, x_mark, emb_p):
    """TokenEmbedding (circular Conv1d) + TimeFeatureEmbedding (Linear) fused into one
    matmul (concat along K) + sinusoidal positional encoding.  Output bf16."""
    B, L, Cin = x.shape
    d_model = emb_p["token_w"].shape[0]
    xt = x.transpose(0, 2, 1)                                  # (B, Cin, L)
    xp = jnp.concatenate([xt[:, :, L - 1:], xt, xt[:, :, :1]], axis=-1)
    cols = [xp[:, :, i:i + L] for i in range(3)]
    patch = jnp.stack(cols, axis=2).transpose(0, 3, 1, 2).reshape(B * L, Cin * 3)
    lhs = jnp.concatenate([patch, x_mark.reshape(B * L, -1).astype(patch.dtype)],
                          axis=1)
    w_tok = jnp.asarray(emb_p["token_w"], jnp.float32).reshape(d_model, Cin * 3).T
    w_tim = jnp.asarray(emb_p["time_w"], jnp.float32).T
    w = jnp.concatenate([w_tok, w_tim], axis=0)                # (Cin*3 + mark, d)
    out = pallas_linear(lhs, w, None)                          # bf16 (B*L, d)
    pe = positional_encoding(L, d_model).astype(jnp.bfloat16)
    return out.reshape(B, L, d_model) + pe[None]


def predict_linear_fn(enc_out, w, b):
    B, L, D = enc_out.shape
    x = enc_out.transpose(0, 2, 1).reshape(B * D, L)
    Tt = w.shape[0]
    y = pallas_linear(x, jnp.asarray(w, jnp.float32).T, b)     # bf16 (B*D, Tt)
    return y.reshape(B, D, Tt).transpose(0, 2, 1)


# ----------------------------------------------------------------------------- #
# TemporalCorrelation / TemporalCorrelation1 (shared; num_kernels differs via params)
# ----------------------------------------------------------------------------- #
def temporal_correlation(x, tcp, ln_g, ln_b, cfg):
    B, T, N = x.shape
    k = cfg["top_k"]
    total = cfg["seq_len"] + cfg["pred_len"]
    period_list, period_weight = fft_for_period(x, k)

    # branch-independent weight packing (hoisted out of the period loop)
    w_gate, b_gate = prep_msgru(tcp, N)
    w1p, b1p, ks1 = prep_inception_stack(tcp["inc1"])
    w2p, b2p, ks2 = prep_inception_stack(tcp["inc2"])
    P = max(max(ks1), max(ks2)) // 2

    branches = []
    for i in range(k):
        period = int(period_list[i])
        if total % period != 0:
            length = (total // period + 1) * period
            out = jnp.concatenate(
                [x, jnp.zeros((B, length - total, N), x.dtype)], axis=1)
        else:
            length = total
            out = x
        # fused MSGRU cell (zero initial state)
        out2d = pallas_msgru(out.reshape(B * length, N), w_gate, b_gate, N)
        H, W = length // period, period
        fmap = out2d.reshape(B, H, W, N).astype(jnp.float32)   # channels-last
        # series_decomp(13) along the length//period axis
        fmap = fmap - moving_avg_along(fmap, 13, axis=1)
        # Inception -> GELU -> Inception, fused in one Pallas kernel
        conv_out = fused_inception(fmap, w1p, b1p, ks1, w2p, b2p, ks2, P, N)
        branches.append(conv_out.reshape(B, length, N)[:, :total, :])

    res_stack = jnp.stack(branches, axis=1)                    # (B, k, total, N) bf16
    pw = jax.nn.softmax(period_weight.astype(jnp.float32), axis=1)   # (B, k)
    # fused: weighted period sum + residual + LayerNorm  (dropout is identity at eval)
    return tc_epilogue(res_stack, x, pw, ln_g, ln_b)


# ----------------------------------------------------------------------------- #
# Full Model forward (forecast path)
# ----------------------------------------------------------------------------- #
def forecast(x_enc, x_mark_enc, params, cfg):
    B, L, C = x_enc.shape
    Tt = cfg["seq_len"] + cfg["pred_len"]
    D = cfg["d_model"]

    x_enc = x_enc.astype(jnp.float32)
    means = x_enc.mean(axis=1, keepdims=True)
    x = x_enc - means
    stdev = jnp.sqrt(x.var(axis=1, keepdims=True) + 1e-5)
    x = x / stdev

    # RevIN 'norm' (affine init: weight=1, bias=0)
    r_mean = x.mean(axis=1, keepdims=True)
    r_std = jnp.sqrt(x.var(axis=1, keepdims=True) + 1e-5)
    x = (x - r_mean) / r_std * params["revin0_w"] + params["revin0_b"]

    seasonal_init, trend_init = series_decomp_multi(x, (13, 17))

    enc_out = data_embedding(seasonal_init, x_mark_enc, params["emb"])
    enc_out = predict_linear_fn(enc_out, params["predict_w"], params["predict_b"])

    enc1 = enc_out
    for tcp in params["model"]:       # TemporalCorrelation stack (+ fused LayerNorm)
        enc1 = temporal_correlation(enc1, tcp, params["ln_g"], params["ln_b"], cfg)
    enc2 = enc_out
    for tcp in params["model1"]:      # TemporalCorrelation1 stack (+ fused LayerNorm)
        enc2 = temporal_correlation(enc2, tcp, params["ln_g"], params["ln_b"], cfg)

    proj_w = jnp.asarray(params["proj_w"], jnp.float32).T
    dec1 = pallas_linear(enc1.reshape(B * Tt, D), proj_w, params["proj_b"],
                         out_dtype=jnp.float32).reshape(B, Tt, -1)
    dec2 = pallas_linear(enc2.reshape(B * Tt, D), proj_w, params["proj_b"],
                         out_dtype=jnp.float32).reshape(B, Tt, -1)

    # trend = Conv1d(seq_len -> seq_len+pred_len, k=3, circular) over the feature dim
    trend = circular_conv1d(trend_init, params["trend_w"], None)   # (B, Tt, enc_in)

    def denorm(d):
        # RevIN 'denorm' (affine reverse; eps*eps per the reference RevIN)
        d = d - params["revin1_b"]
        d = d / (params["revin1_w"] + 1e-5 * 1e-5)
        # TODO(synk): revin_layer1's running mean/stdev are never set by a 'norm' call
        # in the reference forward (would raise in PyTorch); treated as 0 / 1 here.
        d = d * stdev[:, 0, :][:, None, :]
        d = d + means[:, 0, :][:, None, :]
        return d

    dec1 = denorm(dec1 + trend)
    dec2 = denorm(dec2 + trend)
    return dec1, dec2


def model_forward(x_enc, x_mark_enc, x_dec, x_mark_dec, params, cfg, mask=None):
    if cfg["task_name"] == "long_term_forecast":
        d1, d2 = forecast(x_enc, x_mark_enc, params, cfg)
        p = cfg["pred_len"]
        return d1[:, -p:, :], d2[:, -p:, :]
    return None


# ----------------------------------------------------------------------------- #
# Deterministic parameter construction
# ----------------------------------------------------------------------------- #
def init_params(cfg, key):
    d, dff = cfg["d_model"], cfg["d_ff"]
    Tt = cfg["seq_len"] + cfg["pred_len"]
    keys = iter(jax.random.split(key, 256))

    def W(shape, fan_in):
        return (jax.random.normal(next(keys), shape, jnp.float32)
                / np.sqrt(float(fan_in))).astype(jnp.float32)

    params = {
        "emb": {
            "token_w": W((d, cfg["enc_in"], 3), cfg["enc_in"] * 3),
            "time_w": W((d, cfg["mark_dim"]), cfg["mark_dim"]),
        },
        "predict_w": W((Tt, cfg["seq_len"]), cfg["seq_len"]),
        "predict_b": W((Tt,), cfg["seq_len"]),
        "ln_g": jnp.ones((d,), jnp.float32),
        "ln_b": jnp.zeros((d,), jnp.float32),
        "proj_w": W((cfg["c_out"], d), d),
        "proj_b": W((cfg["c_out"],), d),
        "trend_w": W((Tt, cfg["seq_len"], 3), cfg["seq_len"] * 3),
        "revin0_w": jnp.ones((cfg["enc_in"],), jnp.float32),
        "revin0_b": jnp.zeros((cfg["enc_in"],), jnp.float32),
        "revin1_w": jnp.ones((cfg["dec_in"],), jnp.float32),
        "revin1_b": jnp.zeros((cfg["dec_in"],), jnp.float32),
    }

    def make_tc(num_kernels):
        tcp = {
            "rz_w": W((2 * d, 2 * d), 2 * d),
            "rz_b": W((2 * d,), 2 * d),
            "h_w": W((d, 2 * d), 2 * d),
            "h_b": W((d,), 2 * d),
            "inc1": [],
            "inc2": [],
        }
        for ki in range(num_kernels):
            ks = 2 * ki + 1
            tcp["inc1"].append((W((dff, d, ks, ks), d * ks * ks),
                                W((dff,), d * ks * ks)))
            tcp["inc2"].append((W((d, dff, ks, ks), dff * ks * ks),
                                W((d,), dff * ks * ks)))
        return tcp

    params["model"] = [make_tc(cfg["num_kernels"]) for _ in range(cfg["e_layers"])]
    params["model1"] = [make_tc(1) for _ in range(cfg["e_layers"])]
    return params


# ----------------------------------------------------------------------------- #
if __name__ == "__main__":
    cfg = dict(task_name="long_term_forecast",
               seq_len=16, label_len=8, pred_len=8,
               enc_in=4, dec_in=4, c_out=4,
               d_model=32, d_ff=32,
               e_layers=1, top_k=3, num_kernels=2,
               mark_dim=4)   # embed='timeF', freq='h' -> 4 time features

    key = jax.random.PRNGKey(0)
    k1, k2, k3, kp = jax.random.split(key, 4)
    B = 2
    x_enc = jax.random.normal(k1, (B, cfg["seq_len"], cfg["enc_in"]), jnp.float32)
    x_mark_enc = jax.random.normal(k2, (B, cfg["seq_len"], cfg["mark_dim"]), jnp.float32)
    x_dec = jax.random.normal(k3, (B, cfg["label_len"] + cfg["pred_len"], cfg["dec_in"]),
                              jnp.float32)
    x_mark_dec = jnp.zeros((B, cfg["label_len"] + cfg["pred_len"], cfg["mark_dim"]),
                           jnp.float32)

    params = init_params(cfg, kp)
    out1, out2 = model_forward(x_enc, x_mark_enc, x_dec, x_mark_dec, params, cfg)
    jax.block_until_ready((out1, out2))

    assert out1.shape == (B, cfg["pred_len"], cfg["c_out"])
    assert out2.shape == (B, cfg["pred_len"], cfg["c_out"])
    assert bool(jnp.all(jnp.isfinite(out1))) and bool(jnp.all(jnp.isfinite(out2)))
    print("KERNEL_OK")
</pallas_src>

<mosaic_0001>
module attributes {stable_mosaic.version = 11 : i64} {
  func.func @_linear_kernel(%arg0: i32, %arg1: memref<16x16xbf16, #tpu.memory_space<vmem>>, %arg2: memref<16x32xbf16, #tpu.memory_space<vmem>>, %arg3: memref<1x32xf32, #tpu.memory_space<vmem>>, %arg4: memref<16x32xbf16, #tpu.memory_space<vmem>>) attributes {dimension_semantics = [#tpu.dimension_semantics<parallel>], iteration_bounds = array<i64: 2>, scalar_prefetch = 0 : i64, scratch_operands = 0 : i64, tpu.core_type = #tpu.core_type<tc>, window_params = [{transform_indices = @transform_0, window_bounds = array<i64: 16, 16>}, {pipeline_mode = #tpu.pipeline_mode<synchronous>, transform_indices = @transform_1, window_bounds = array<i64: 16, 32>}, {pipeline_mode = #tpu.pipeline_mode<synchronous>, transform_indices = @transform_2, window_bounds = array<i64: 1, 32>}, {transform_indices = @transform_3, window_bounds = array<i64: 16, 32>}]} {
    %c0 = arith.constant 0 : index
    %c0_0 = arith.constant 0 : index
    %0 = vector.load %arg1[%c0, %c0_0] : memref<16x16xbf16, #tpu.memory_space<vmem>>, vector<16x16xbf16>
    %c0_1 = arith.constant 0 : index
    %c0_2 = arith.constant 0 : index
    %1 = vector.load %arg2[%c0_1, %c0_2] : memref<16x32xbf16, #tpu.memory_space<vmem>>, vector<16x32xbf16>
    %cst = arith.constant dense<0.000000e+00> : vector<16x32xf32>
    %2 = tpu.matmul %0, %1, %cst {dimension_numbers = #tpu.dot_dimension_numbers<[1], [0], [0], [1], [0, 0, 1, 1], [], []>} : vector<16x16xbf16>, vector<16x32xbf16>, vector<16x32xf32> -> vector<16x32xf32>
    %c0_3 = arith.constant 0 : index
    %c0_4 = arith.constant 0 : index
    %3 = vector.load %arg3[%c0_3, %c0_4] : memref<1x32xf32, #tpu.memory_space<vmem>>, vector<1x32xf32>
    %4 = vector.broadcast %3 : vector<1x32xf32> to vector<16x32xf32>
    %5 = arith.addf %2, %4 : vector<16x32xf32>
    %6 = arith.truncf %5 : vector<16x32xf32> to vector<16x32xbf16>
    %c0_5 = arith.constant 0 : index
    %c0_6 = arith.constant 0 : index
    %7 = vector.load %arg4[%c0_5, %c0_6] : memref<16x32xbf16, #tpu.memory_space<vmem>>, vector<16x32xbf16>
    tpu.vector_store %arg4[%c0_5, %c0_6], %6 {strides = array<i32>} : memref<16x32xbf16, #tpu.memory_space<vmem>>, vector<16x32xbf16>,
    return
  }
  func.func @transform_0(%arg0: i32) -> (i32, i32) {
    %c0_i32 = arith.constant 0 : i32
    %c0_i32_0 = arith.constant 0 : i32
    return %arg0, %c0_i32 : i32, i32
  }
  func.func @transform_1(%arg0: i32) -> (i32, i32) {
    %c0_i32 = arith.constant 0 : i32
    %c0_i32_0 = arith.constant 0 : i32
    %c0_i32_1 = arith.constant 0 : i32
    return %c0_i32, %c0_i32_0 : i32, i32
  }
  func.func @transform_2(%arg0: i32) -> (i32, i32) {
    %c0_i32 = arith.constant 0 : i32
    %c0_i32_0 = arith.constant 0 : i32
    %c0_i32_1 = arith.constant 0 : i32
    return %c0_i32, %c0_i32_0 : i32, i32
  }
  func.func @transform_3(%arg0: i32) -> (i32, i32) {
    %c0_i32 = arith.constant 0 : i32
    %c0_i32_0 = arith.constant 0 : i32
    return %arg0, %c0_i32 : i32, i32
  }
}

</mosaic_0001>

<bundles_post_ra>
// kernel: tpu_custom_call.1
= control target key start
LH: loop header
LB: loop body
LE: loop exit
PB: predicated region body
PF: predicated region fallthrough
CT: control target
= control target key end

     0   :  { %8 = vsyncpa [#allocation3], 0  ;;  %s598_s0 = inlined_call_operand.vmem [shape: bf16[32,16], index: 0, kind: input, shape index: {}]   ;;  %s599_s1 = inlined_call_operand.vmem [shape: bf16[16,32], index: 1, kind: input, shape index: {}]   ;;  %s600_s2 = inlined_call_operand.vmem [shape: f32[1,32], index: 2, kind: input, shape index: {}]   ;;  %s601_s3 = inlined_call_operand.hbm [shape: bf16[32,32], index: 3, kind: output, shape index: {}]  }
   0x1   :  { %10 = vsyncpa [#allocation3 + $0x1], 0  ;;  %s490_s12 = smov 0   ;;  %s492_s13 = smov 0  }
   0x2   :  { %s494_s14 = smov 0   ;;  %s496_s15 = smov 0  }
   0x3 LB: > { %s511_s16 = sadd.s32 4294967295, %s463_s15   ;;  %s327_s17 = sadd.s32 4294967294, %s463_s15   ;;  %s463_s15 = sphi %s496_s15, %s607_s15   ;;  %s459_s14 = sphi %s494_s14, %s606_s14   ;;  %s455_s13 = sphi %s492_s13, %s605_s13   ;;  %s451_s12 = sphi %s490_s12, %s604_s12  }
   0x4   : > { %s515_s18 = sadd.s32 1, %s463_s15   ;;  %s91_s19 = sadd.s32 1, %s459_s14 }
   0x5   : > { %s88_s20 = ssub.s32 %s463_s15, %s515_s18  ;;  %p101_p0 = scmp.ne.s32.totalorder %s459_s14, %s455_s13 }
   0x6   : > { %p89_p1 = scmp.eq.s32.totalorder %s88_s20, 0  ;;  %p102_p2 = scmp.eq.s32.totalorder %s511_s16, 1 }
   0x7   : > { %p107_p3 = scmp.ne.s32.totalorder %s455_s13, %s451_s12  ;;  %p108_p4 = scmp.eq.s32.totalorder %s327_s17, 1 }
   0x8   : > { %s526_s21 = scalar_select %p89_p1, %s459_s14, %s91_s19  }
   0x9   : > { %p528_p5 = por %p102_p2, %p101_p0  ;;  %p532_p6 = por %p108_p4, %p107_p3 }
   0xa   : > { %p330_p7 = scmp.ge.s32.totalorder %s463_s15, 1  ;;  %p141_p8 = scmp.lt.s32.totalorder %s463_s15, 3 }
   0xc   : > { %p142_p9 = pnand %p330_p7, %p141_p8 }
   0xd   : > { %v399_v0 = vld [vmem:[%s599_s1] sm:$0xff] (!%p142_p9)   ;;  %v465_v1 = vmov (!%p142_p9), 0.0   ;;  %s332_s26 = sshll.u32 (!%p142_p9), %s511_s16, 1  ;;  %vm466_vm0 = vmmov (!%p142_p9), 0   ;;  %vm195_vm1 = vcmask (!%p142_p9), 130048   ;;  %s162_s4 = sand.u32 (!%p142_p9), 1, %s455_s13  }
   0xe   : > { %145 = sbr.rel (%p142_p9) target bundleno = 258 (0x102), region = 32  ;;  %350 = vmatprep.subr.bf16.mxu0 (!%p142_p9), %v465_v1  ;;  %352 = vmatprep.mubr.msk.bf16.mxu0 (!%p142_p9), %vm466_vm0, %v465_v1  ;;  %p166_p10 = scmp.lt.s32.totalorder (!%p142_p9), %s332_s26, 3  ;;  %v334_v3 = vld [vmem:[%s600_s2] ss:$0 sm:$0xff] (!%p142_p9)  ;;  %vm248_vm2 = vcmask (!%p142_p9), 257024  }
   0xf   : > { %351 = vmatpush3.bf16.msra.mxu0 (!%p142_p9), %v399_v0  ;;  %s331_s5 = sshll.u32 (!%p142_p9), %s162_s4, 3  ;;  %s347_s10 = sshll.u32 (!%p142_p9), %s511_s16, 7 }
  0x10   : > { %s164_s8 = scalar_lea.vmem (!%p142_p9), [#allocation2], %s331_s5  ;;  %s555_s19 = scalar_lea.hbm (!%p142_p9), %s601_s3, %s347_s10 }
  0x11   : > { %s265_s9 = sshll.u32 (!%p142_p9), %s164_s8, 4  ;;  %s557_s20 = scalar_lea.sflag (!%p142_p9), [#allocation3], %s162_s4  ;;  %s550_s9 = int_to_ptr.vmem [resolvable:$true] %s265_s9 }
  0x12   : > { %s401_s16 = scalar_lea.vmem (!%p142_p9), %s550_s9, 128  ;;  %s467_s24 = smov (!%p142_p9), [#allocation2]  }
  0x13   : > { %p402_p11 = scmp.ne.s32.totalorder (!%p142_p9), %s550_s9, %s401_s16  ;;  %s405_s25 = sshll.u32 (!%p142_p9), %s467_s24, 4  ;;  %s406_s25 = int_to_ptr.vmem [resolvable:$false] %s405_s25 }
  0x14   : > { %p408_p0 = scmp.lt.s32.totalorder (!%p142_p9), %s550_s9, %s406_s25 }
  0x15   : > { %s609_s26 = smov (!%p166_p10, %s332_s26), 3  ;;  %p403_p12 = pnand %p402_p11, %p528_p5 }
  0x16   : > { %s333_s27 = sshll.u32 %s609_s26, 2  ;;  %s407_s26 = scalar_lea.vmem %s406_s25, 256 }
  0x17   : > { %s169_s30 = scalar_lea.vmem %s598_s0, %s333_s27  ;;  %p404_p13 = pneg %p403_p12 }
  0x18   : > { %v400_v2 = vld [vmem:[%s169_s30] sm:$0xff]   ;;  %p409_p1 = scmp.lt.s32.totalorder %s407_s26, %s401_s16 }
  0x19   : > { %353 = vmatmul.mubr.msk.bf16.vlgmr.msra.gmra.mrb[0].mxu0 %vm195_vm1, %v400_v2 }
  0x1a   : > { %p410_p2 = por %p409_p1, %p408_p0 }
  0x1c   : > { %p411_p3 = pnand %p410_p2, %p404_p13 }
  0xec   : > { %v233_v4 = vpop.f32.mrb[0].mxu0 }
  0xed   : > { %v234_v5 = vadd.f32 %v334_v3, %v233_v4  ;;  %v354_v6 = vpop.f32.mrb[1].mxu0 }
  0xee   : > { %v236_v7 = vpop.f32.mrb[2].mxu0 }
  0xef   : > { %v345_v8 = vpack.c.bf16 %v234_v5, %v234_v5  ;;  %v237_v9 = vadd.f32 %v334_v3, %v236_v7  ;;  %v355_v10 = vpop.f32.mrb[3].mxu0 }
  0xf1   : > { %249 = vst.msk [vmem:[%s164_s8] sm:$0xf] %vm248_vm2, %v345_v8  ;;  %v346_v11 = vpack.c.bf16 %v237_v9, %v237_v9 }
  0xf3   : > { %250 = vst.msk [vmem:[%s164_s8 + $0x4] sm:$0xf] %vm248_vm2, %v346_v11 }
  0xf4   : > { %414 = shalt.err (!%p411_p3)
}
  0xf5   : > { %s415_s27 = scalar_lea.hbm %s555_s19, 128  ;;  %s419_s30 = scalar_lea.hbm %s601_s3, 256 }
  0xf6   : > { %p416_p4 = scmp.ne.s32.totalorder %s555_s19, %s415_s27  ;;  %p420_p9 = scmp.lt.u32.totalorder %s555_s19, %s601_s3 }
  0xf7   : > { %p421_p10 = scmp.lt.u32.totalorder %s419_s30, %s415_s27  ;;  %p423_p12 = scmp.lt.u32.totalorder %s415_s27, %s555_s19 }
  0xf8   : > { %p417_p7 = pnand %p416_p4, %p528_p5 }
  0xf9   : > { %p422_p11 = por %p421_p10, %p420_p9 }
  0xfa   : > { %p418_p8 = pneg %p417_p7 }
  0xfb   : > { %p424_p13 = por %p423_p12, %p422_p11 }
  0xfd   : > { %p425_p0 = pnand %p424_p13, %p418_p8 }
  0xff   : > { %428 = shalt.err (!%p425_p0)
}
 0x100   : > { %s468_s6 = smov 64   ;;  %s469_s7 = smov 4  }
 0x101   : > { %356 = dma.vmem_to_hbm [thread:$0]  (%p528_p5), %s550_s9, 128, %s555_s19, %s557_s20, %s468_s6, %s468_s6, %s469_s7  }
 0x102 PF: > { %p362_p1 = scmp.ge.s32.totalorder %s463_s15, 2  ;;  %s280_s8 = sand.u32 1, %s451_s12  }
 0x103   : > { %s281_s10 = scalar_lea.sflag [#allocation3], %s280_s8 }
 0x104   : > { %p359_p2 = pnand %p362_p1, %p532_p6 }
 0x106   : > { %446 = dma.done.wait (!%p359_p2), %s281_s10, 128  }
 0x107   : > { %448 = vsyncadd (!%p359_p2), %s281_s10, 4294967168  ;;  %p13_p3 = scmp.ge.s32.totalorder %s515_s18, 4   ;;  %s604_s12 = smov %s455_s13 }
 0x108   : > { %s605_s13 = smov %s459_s14  ;;  %s606_s14 = smov %s526_s21 }
 0x109   : > { %s607_s15 = smov %s515_s18  ;;  %15 = sbr.rel (!%p13_p3) target bundleno = 3 (0x3), region = 67 }
 0x110   :  { %286 = vsyncpa [#allocation3], 1 }
 0x111   :  { %288 = vsyncpa [#allocation3 + $0x1], 1 }

</bundles_post_ra>
